<compile_context>
chip_gen: v7x
topology: tpu7x:2x2x1
jax: 0.10.0
libtpu: 0.0.40
codegen_flags: <defaults>
</compile_context>

<pallas_src>
import functools
import math

import jax
import jax.numpy as jnp
from jax.experimental import pallas as pl
from jax.experimental.pallas import tpu as pltpu


def _snaive_kernel(x_ref, o_ref, *, start, size_in, size_out, k):
    """x_ref: (tbk, k*size_in) block of k-row-packed input.
    o_ref: (tbk, k*size_out) block of k-row-packed seasonal slices."""
    x = x_ref[...]                                        # (tbk, k*size_in)
    # For each of the k original rows packed into a kernel row, extract its
    # seasonal window [start, start+size_out) and lay the k windows out
    # contiguously along the lane axis (lane-dense store).
    pieces = [
        x[:, j * size_in + start: j * size_in + start + size_out]
        for j in range(k)
    ]
    packed = pieces[0] if k == 1 else jnp.concatenate(pieces, axis=-1)
    o_ref[...] = packed.astype(o_ref.dtype)


def snaive_forward(x, dummy_weight=None, dummy_bias=None, *,
                   size_in, size_out, lag, batch_tile=512):
    """Seasonal-naive forward.

    x: (B, size_in).  dummy_weight/dummy_bias are accepted to mirror the
    PyTorch module's interface but are unused (their contribution is
    multiplied by 0.0 in the reference module).  Returns (B, size_out).
    """
    del dummy_weight, dummy_bias  # dead path in the reference module
    B, si = x.shape
    assert si == size_in
    assert size_out <= lag <= size_in, "need size_out <= lag <= size_in"
    start = size_in - lag

    # --- lane-packing factor: fold k rows so k*size_out is a multiple of 128
    # (when B allows it); the fold is a free row-major reshape.
    k_full = 128 // math.gcd(size_out, 128)       # smallest k: k*size_out % 128 == 0
    k = math.gcd(k_full, B)                       # must divide B
    Bp = B // k                                   # packed row count

    # --- packed-row tile size: ~batch_tile source rows per grid step, shrunk
    # to a divisor of Bp with a legal sublane count (multiple of 8 or full dim).
    tbk = min(max(batch_tile // max(k, 1), 1), Bp)
    while tbk > 1 and (Bp % tbk or (tbk != Bp and tbk % 8)):
        tbk -= 1
    if Bp % tbk or (tbk != Bp and tbk % 8):
        tbk = Bp

    # VMEM budget (double-buffered in+out) ~= 2 * tbk*k * (size_in+size_out) * 4B.
    # For very large size_in cap batch_tile (esp. v7x, 64 MiB VMEM) or raise
    # vmem_limit_bytes via pltpu.CompilerParams.
    xp = x.reshape(Bp, k * size_in)               # free, row-major

    kernel = functools.partial(
        _snaive_kernel, start=start, size_in=size_in, size_out=size_out, k=k)

    out_packed = pl.pallas_call(
        kernel,
        out_shape=jax.ShapeDtypeStruct((Bp, k * size_out), x.dtype),
        grid_spec=pltpu.PrefetchScalarGridSpec(
            num_scalar_prefetch=0,
            grid=(Bp // tbk,),
            in_specs=[pl.BlockSpec((tbk, k * size_in), lambda i: (i, 0))],
            out_specs=pl.BlockSpec((tbk, k * size_out), lambda i: (i, 0)),
        ),
        compiler_params=pltpu.CompilerParams(
            dimension_semantics=("parallel",)),
    )(xp)

    return out_packed.reshape(B, size_out)        # free, row-major


if __name__ == "__main__":
    # Module config (small; consistent with the forward's assumptions).
    size_in, size_out, lag = 32, 8, 16
    batch = 256

    key = jax.random.PRNGKey(0)
    kx, kw, kb = jax.random.split(key, 3)

    x = jax.random.normal(kx, (batch, size_in), dtype=jnp.float32)
    # Dummy Linear(size_in, 1) params (dead path in the module; kept only to
    # mirror the PyTorch interface / reference computation).
    bound = 1.0 / jnp.sqrt(jnp.float32(size_in))
    weight = jax.random.uniform(kw, (1, size_in), jnp.float32, -bound, bound)
    bias = jax.random.uniform(kb, (1,), jnp.float32, -bound, bound)

    out = snaive_forward(x, weight, bias,
                         size_in=size_in, size_out=size_out, lag=lag,
                         batch_tile=512)
    out = jax.block_until_ready(out)

    # Reference check in plain JAX (matches the PyTorch module for finite x).
    dummy_ref = x @ weight.T + bias                       # (B, 1)
    start = size_in - lag
    naive_ref = x[:, start:start + size_out]              # (B, size_out)
    expected = naive_ref + 0.0 * dummy_ref
    assert out.shape == (batch, size_out)
    assert jnp.allclose(out, expected, atol=1e-5, rtol=1e-5)

    print("KERNEL_OK")
</pallas_src>

<mosaic_0001>
module attributes {stable_mosaic.version = 11 : i64} {
  func.func @_snaive_kernel(%arg0: i32, %arg1: memref<16x512xf32, #tpu.memory_space<vmem>>, %arg2: memref<16x128xf32, #tpu.memory_space<vmem>>) attributes {dimension_semantics = [#tpu.dimension_semantics<parallel>], iteration_bounds = array<i64: 1>, scalar_prefetch = 0 : i64, scratch_operands = 0 : i64, tpu.core_type = #tpu.core_type<tc>, window_params = [{transform_indices = @transform_0, window_bounds = array<i64: 16, 512>}, {transform_indices = @transform_1, window_bounds = array<i64: 16, 128>}]} {
    %c0 = arith.constant 0 : index
    %c0_0 = arith.constant 0 : index
    %0 = vector.load %arg1[%c0, %c0_0] : memref<16x512xf32, #tpu.memory_space<vmem>>, vector<16x512xf32>
    %1 = vector.extract_strided_slice %0 {offsets = [0, 16], sizes = [16, 8], strides = [1, 1]} : vector<16x512xf32> to vector<16x8xf32>
    %2 = vector.extract_strided_slice %0 {offsets = [0, 48], sizes = [16, 8], strides = [1, 1]} : vector<16x512xf32> to vector<16x8xf32>
    %3 = vector.extract_strided_slice %0 {offsets = [0, 80], sizes = [16, 8], strides = [1, 1]} : vector<16x512xf32> to vector<16x8xf32>
    %4 = vector.extract_strided_slice %0 {offsets = [0, 112], sizes = [16, 8], strides = [1, 1]} : vector<16x512xf32> to vector<16x8xf32>
    %5 = vector.extract_strided_slice %0 {offsets = [0, 144], sizes = [16, 8], strides = [1, 1]} : vector<16x512xf32> to vector<16x8xf32>
    %6 = vector.extract_strided_slice %0 {offsets = [0, 176], sizes = [16, 8], strides = [1, 1]} : vector<16x512xf32> to vector<16x8xf32>
    %7 = vector.extract_strided_slice %0 {offsets = [0, 208], sizes = [16, 8], strides = [1, 1]} : vector<16x512xf32> to vector<16x8xf32>
    %8 = vector.extract_strided_slice %0 {offsets = [0, 240], sizes = [16, 8], strides = [1, 1]} : vector<16x512xf32> to vector<16x8xf32>
    %9 = vector.extract_strided_slice %0 {offsets = [0, 272], sizes = [16, 8], strides = [1, 1]} : vector<16x512xf32> to vector<16x8xf32>
    %10 = vector.extract_strided_slice %0 {offsets = [0, 304], sizes = [16, 8], strides = [1, 1]} : vector<16x512xf32> to vector<16x8xf32>
    %11 = vector.extract_strided_slice %0 {offsets = [0, 336], sizes = [16, 8], strides = [1, 1]} : vector<16x512xf32> to vector<16x8xf32>
    %12 = vector.extract_strided_slice %0 {offsets = [0, 368], sizes = [16, 8], strides = [1, 1]} : vector<16x512xf32> to vector<16x8xf32>
    %13 = vector.extract_strided_slice %0 {offsets = [0, 400], sizes = [16, 8], strides = [1, 1]} : vector<16x512xf32> to vector<16x8xf32>
    %14 = vector.extract_strided_slice %0 {offsets = [0, 432], sizes = [16, 8], strides = [1, 1]} : vector<16x512xf32> to vector<16x8xf32>
    %15 = vector.extract_strided_slice %0 {offsets = [0, 464], sizes = [16, 8], strides = [1, 1]} : vector<16x512xf32> to vector<16x8xf32>
    %16 = vector.extract_strided_slice %0 {offsets = [0, 496], sizes = [16, 8], strides = [1, 1]} : vector<16x512xf32> to vector<16x8xf32>
    %17 = tpu.concatenate %1, %2, %3, %4, %5, %6, %7, %8, %9, %10, %11, %12, %13, %14, %15, %16 in 1 : vector<16x8xf32>, vector<16x8xf32>, vector<16x8xf32>, vector<16x8xf32>, vector<16x8xf32>, vector<16x8xf32>, vector<16x8xf32>, vector<16x8xf32>, vector<16x8xf32>, vector<16x8xf32>, vector<16x8xf32>, vector<16x8xf32>, vector<16x8xf32>, vector<16x8xf32>, vector<16x8xf32>, vector<16x8xf32> -> vector<16x128xf32>
    %c0_1 = arith.constant 0 : index
    %c0_2 = arith.constant 0 : index
    %18 = vector.load %arg2[%c0_1, %c0_2] : memref<16x128xf32, #tpu.memory_space<vmem>>, vector<16x128xf32>
    tpu.vector_store %arg2[%c0_1, %c0_2], %17 {strides = array<i32>} : memref<16x128xf32, #tpu.memory_space<vmem>>, vector<16x128xf32>,
    return
  }
  func.func @transform_0(%arg0: i32) -> (i32, i32) {
    %c0_i32 = arith.constant 0 : i32
    %c0_i32_0 = arith.constant 0 : i32
    return %arg0, %c0_i32 : i32, i32
  }
  func.func @transform_1(%arg0: i32) -> (i32, i32) {
    %c0_i32 = arith.constant 0 : i32
    %c0_i32_0 = arith.constant 0 : i32
    return %arg0, %c0_i32 : i32, i32
  }
}

</mosaic_0001>

<bundles_post_ra>
// kernel: tpu_custom_call.1
= control target key start
LH: loop header
LB: loop body
LE: loop exit
PB: predicated region body
PF: predicated region fallthrough
CT: control target
= control target key end

     0   :  { %6 = vsyncpa [#allocation3], 0  ;;  %s331_s0 = inlined_call_operand.hbm [shape: f32[16,512], index: 0, kind: input, shape index: {}]   ;;  %s332_s1 = inlined_call_operand.hbm [shape: f32[16,128], index: 1, kind: output, shape index: {}]  }
   0x1   :  { %7 = vsyncpa [#allocation4], 0  ;;  %s260_s6 = smov [#allocation2]   ;;  %s212_s10 = scalar_lea.hbm %s331_s0, 1024 }
   0x2   :  { %s13_s7 = sshll.u32 %s260_s6, 4  ;;  %p213_p0 = scmp.ne.s32.totalorder %s331_s0, %s212_s10  ;;  %s14_s7 = int_to_ptr.vmem [resolvable:$true] %s13_s7 }
   0x3   :  { %p216_p1 = scmp.lt.u32.totalorder %s212_s10, %s331_s0 }
   0x5   :  { %p218_p2 = pnand %p216_p1, %p213_p0 }
   0x7   :  { %221 = shalt.err (!%p218_p2)
}
   0x8   :  { %s222_s15 = scalar_lea.vmem %s14_s7, 1024  ;;  %p227_p4 = scmp.lt.s32.totalorder %s14_s7, %s14_s7 }
   0x9   :  { %p223_p3 = scmp.ne.s32.totalorder %s14_s7, %s222_s15  ;;  %p228_p5 = scmp.lt.s32.totalorder %s222_s15, %s222_s15 }
   0xb   :  { %p229_p6 = por %p228_p5, %p227_p4 }
   0xd   :  { %p230_p7 = pnand %p229_p6, %p223_p3 }
   0xf   :  { %233 = shalt.err (!%p230_p7)
}
  0x10   :  { %s261_s16 = smov 512   ;;  %s262_s17 = smov 32  }
  0x11   :  { %19 = dma.hbm_to_vmem [thread:$0]  %s331_s0, 1024, %s14_s7, [#allocation3], %s261_s16, %s261_s16, %s262_s17  }
  0x12   :  { %256 = dma.done.wait [#allocation3], 1024  }
  0x13   :  { %257 = vsyncadd [#allocation3], 4294966272  ;;  %v23_v0 = vld [vmem:[#allocation2] sm:$0xff]  ;;  %s263_s20 = smov 88   ;;  %s264_s21 = smov 112   ;;  %v28_v2 = vld [vmem:[#allocation2 + $0x28] sm:$0xff] }
  0x14   :  { %39 = vrot.lane.b32.xlu1 %v23_v0, %s263_s20  ;;  %33 = vrot.lane.b32.xlu0 %v23_v0, %s264_s21  ;;  %v27_v1 = vld [vmem:[#allocation2 + $0x20] sm:$0xff]  ;;  %s265_s22 = smov 64   ;;  %s266_s23 = smov 40   ;;  %v24_v3 = vld [vmem:[#allocation2 + $0x8] sm:$0xff]  ;;  %v302_v4 = vld [vmem:[#allocation2 + $0x30] sm:$0xff]  ;;  %vm129_vm0 = vcmask 64512  }
  0x15   :  { %s267_s24 = smov 16   ;;  %s268_s0 = smov 120   ;;  %v304_v5 = vld [vmem:[#allocation2 + $0x10] sm:$0xff]  ;;  %v30_v6 = vld [vmem:[#allocation2 + $0x38] sm:$0xff]  ;;  %vm132_vm1 = vcmask 130048   ;;  %vm135_vm2 = vcmask 195584  }
  0x16   :  { %s269_s25 = smov 96   ;;  %s270_s26 = smov 72   ;;  %v26_v7 = vld [vmem:[#allocation2 + $0x18] sm:$0xff]  ;;  %vm138_vm3 = vcmask 261120   ;;  %vm141_vm4 = vcmask 326656   ;;  %vm144_vm5 = vcmask 392192  }
  0x17   :  { %s271_s27 = smov 48   ;;  %s272_s28 = smov 24   ;;  %vm147_vm6 = vcmask 457728   ;;  %vm150_vm7 = vcmask 523264   ;;  %vm153_vm8 = vcmask 588800   ;;  %vm156_vm9 = vcmask 654336  }
  0x18   :  { %41 = vrot.lane.b32.xlu1 %v27_v1, %s263_s20  ;;  %35 = vrot.lane.b32.xlu0 %v27_v1, %s264_s21  ;;  %s273_s29 = smov 104   ;;  %s274_s30 = smov 80   ;;  %vm159_vm10 = vcmask 719872   ;;  %vm162_vm11 = vcmask 785408   ;;  %vm165_vm12 = vcmask 850944   ;;  %vm168_vm13 = vcmask 916480  }
  0x19   :  { %s275_s2 = smov 56   ;;  %s276_s3 = smov 8   ;;  %vm171_vm14 = vcmask 982016  }
  0x1a   :  { %s277_s4 = smov [#allocation5]  }
  0x1b   :  { %s181_s5 = sshll.u32 %s277_s4, 4  ;;  %s182_s5 = int_to_ptr.vmem [resolvable:$true] %s181_s5 }
  0x1c   :  { %47 = vrot.lane.b32.xlu1 %v27_v1, %s265_s22  ;;  %45 = vrot.lane.b32.xlu0 %v23_v0, %s265_s22  ;;  %s234_s6 = scalar_lea.vmem %s182_s5, 256  ;;  %p239_p9 = scmp.lt.s32.totalorder %s182_s5, %s182_s5 }
  0x1d   :  { %p235_p8 = scmp.ne.s32.totalorder %s182_s5, %s234_s6  ;;  %p240_p10 = scmp.lt.s32.totalorder %s234_s6, %s234_s6 }
  0x1f   :  { %p241_p11 = por %p240_p10, %p239_p9 }
  0x20   :  { %53 = vrot.lane.b32.xlu1 %v27_v1, %s266_s23  ;;  %51 = vrot.lane.b32.xlu0 %v23_v0, %s266_s23 }
  0x21   :  { %p242_p12 = pnand %p241_p11, %p235_p8 }
  0x24   :  { %61 = vrot.lane.b32.xlu1 %v28_v2, %s267_s24  ;;  %59 = vrot.lane.b32.xlu0 %v24_v3, %s267_s24 }
  0x28   :  { %67 = vrot.lane.b32.xlu1 %v28_v2, %s268_s0  ;;  %65 = vrot.lane.b32.xlu0 %v24_v3, %s268_s0 }
  0x2c   :  { %73 = vrot.lane.b32.xlu1 %v28_v2, %s269_s25  ;;  %71 = vrot.lane.b32.xlu0 %v24_v3, %s269_s25 }
  0x30   :  { %79 = vrot.lane.b32.xlu1 %v28_v2, %s270_s26  ;;  %77 = vrot.lane.b32.xlu0 %v24_v3, %s270_s26 }
  0x34   :  { %87 = vrot.lane.b32.xlu1 %v302_v4, %s271_s27  ;;  %85 = vrot.lane.b32.xlu0 %v304_v5, %s271_s27 }
  0x38   :  { %93 = vrot.lane.b32.xlu1 %v302_v4, %s272_s28  ;;  %91 = vrot.lane.b32.xlu0 %v304_v5, %s272_s28 }
  0x3c   :  { %99 = vrot.lane.b32.xlu1 %v302_v4, %s273_s29  ;;  %97 = vrot.lane.b32.xlu0 %v304_v5, %s273_s29 }
  0x40   :  { %107 = vrot.lane.b32.xlu1 %v30_v6, %s274_s30  ;;  %105 = vrot.lane.b32.xlu0 %v26_v7, %s274_s30 }
  0x44   :  { %113 = vrot.lane.b32.xlu1 %v30_v6, %s275_s2  ;;  %111 = vrot.lane.b32.xlu0 %v26_v7, %s275_s2 }
  0x48   :  { %119 = vrot.lane.b32.xlu1 %v30_v6, %s262_s17  ;;  %117 = vrot.lane.b32.xlu0 %v26_v7, %s262_s17 }
  0x4c   :  { %125 = vrot.lane.b32.xlu1 %v30_v6, %s276_s3  ;;  %123 = vrot.lane.b32.xlu0 %v26_v7, %s276_s3 }
  0x86   :  { %v40_v8 = vpop.permute.xlu1 %39  ;;  %v34_v9 = vpop.permute.xlu0 %33 }
  0x87   :  { %v130_v30 = vsel %vm129_vm0, %v34_v9, %v40_v8 }
  0x8a   :  { %v42_v10 = vpop.permute.xlu1 %41  ;;  %v36_v11 = vpop.permute.xlu0 %35 }
  0x8b   :  { %v131_v31 = vsel %vm129_vm0, %v36_v11, %v42_v10 }
  0x8e   :  { %v48_v12 = vpop.permute.xlu1 %47  ;;  %v46_v13 = vpop.permute.xlu0 %45 }
  0x8f   :  { %v134_v32 = vsel %vm132_vm1, %v131_v31, %v48_v12  ;;  %v133_v33 = vsel %vm132_vm1, %v130_v30, %v46_v13 }
  0x92   :  { %v54_v14 = vpop.permute.xlu1 %53  ;;  %v52_v15 = vpop.permute.xlu0 %51 }
  0x93   :  { %v137_v34 = vsel %vm135_vm2, %v134_v32, %v54_v14  ;;  %v136_v35 = vsel %vm135_vm2, %v133_v33, %v52_v15 }
  0x96   :  { %v62_v16 = vpop.permute.xlu1 %61  ;;  %v60_v17 = vpop.permute.xlu0 %59 }
  0x97   :  { %v140_v36 = vsel %vm138_vm3, %v137_v34, %v62_v16  ;;  %v139_v37 = vsel %vm138_vm3, %v136_v35, %v60_v17 }
  0x9a   :  { %v68_v18 = vpop.permute.xlu1 %67  ;;  %v66_v19 = vpop.permute.xlu0 %65 }
  0x9b   :  { %v143_v40 = vsel %vm141_vm4, %v140_v36, %v68_v18  ;;  %v142_v41 = vsel %vm141_vm4, %v139_v37, %v66_v19 }
  0x9e   :  { %v74_v20 = vpop.permute.xlu1 %73  ;;  %v72_v21 = vpop.permute.xlu0 %71 }
  0x9f   :  { %v146_v42 = vsel %vm144_vm5, %v143_v40, %v74_v20  ;;  %v145_v43 = vsel %vm144_vm5, %v142_v41, %v72_v21 }
  0xa2   :  { %v80_v22 = vpop.permute.xlu1 %79  ;;  %v78_v23 = vpop.permute.xlu0 %77 }
  0xa3   :  { %v149_v44 = vsel %vm147_vm6, %v146_v42, %v80_v22  ;;  %v148_v45 = vsel %vm147_vm6, %v145_v43, %v78_v23 }
  0xa6   :  { %v88_v24 = vpop.permute.xlu1 %87  ;;  %v86_v25 = vpop.permute.xlu0 %85 }
  0xa7   :  { %v152_v46 = vsel %vm150_vm7, %v149_v44, %v88_v24  ;;  %v151_v47 = vsel %vm150_vm7, %v148_v45, %v86_v25 }
  0xaa   :  { %v94_v26 = vpop.permute.xlu1 %93  ;;  %v92_v27 = vpop.permute.xlu0 %91 }
  0xab   :  { %v155_v50 = vsel %vm153_vm8, %v152_v46, %v94_v26  ;;  %v154_v51 = vsel %vm153_vm8, %v151_v47, %v92_v27 }
  0xac   :  { %v158_v52 = vsel %vm156_vm9, %v155_v50, %v302_v4  ;;  %v157_v53 = vsel %vm156_vm9, %v154_v51, %v304_v5 }
  0xae   :  { %v100_v28 = vpop.permute.xlu1 %99  ;;  %v98_v29 = vpop.permute.xlu0 %97 }
  0xaf   :  { %v161_v56 = vsel %vm159_vm10, %v158_v52, %v100_v28  ;;  %v160_v57 = vsel %vm159_vm10, %v157_v53, %v98_v29 }
  0xb2   :  { %v108_v38 = vpop.permute.xlu1 %107  ;;  %v106_v39 = vpop.permute.xlu0 %105 }
  0xb3   :  { %v164_v58 = vsel %vm162_vm11, %v161_v56, %v108_v38  ;;  %v163_v59 = vsel %vm162_vm11, %v160_v57, %v106_v39 }
  0xb6   :  { %v114_v48 = vpop.permute.xlu1 %113  ;;  %v112_v49 = vpop.permute.xlu0 %111 }
  0xb7   :  { %v167_v60 = vsel %vm165_vm12, %v164_v58, %v114_v48  ;;  %v166_v61 = vsel %vm165_vm12, %v163_v59, %v112_v49 }
  0xba   :  { %v120_v54 = vpop.permute.xlu1 %119  ;;  %v118_v55 = vpop.permute.xlu0 %117 }
  0xbb   :  { %v170_v62 = vsel %vm168_vm13, %v167_v60, %v120_v54  ;;  %v169_v63 = vsel %vm168_vm13, %v166_v61, %v118_v55 }
  0xbe   :  { %v126_v0 = vpop.permute.xlu1 %125  ;;  %v124_v1 = vpop.permute.xlu0 %123 }
  0xbf   :  { %v173_v2 = vsel %vm171_vm14, %v170_v62, %v126_v0  ;;  %v172_v3 = vsel %vm171_vm14, %v169_v63, %v124_v1 }
  0xc0   :  { %175 = vst [vmem:[#allocation5 + $0x8] sm:$0xff] %v173_v2  ;;  %174 = vst [vmem:[#allocation5] sm:$0xff] %v172_v3 }
  0xc1   :  { %245 = shalt.err (!%p242_p12)
}
  0xc2   :  { %s246_s9 = scalar_lea.hbm %s332_s1, 256 }
  0xc3   :  { %p247_p13 = scmp.ne.s32.totalorder %s332_s1, %s246_s9  ;;  %p250_p0 = scmp.lt.u32.totalorder %s246_s9, %s332_s1 }
  0xc5   :  { %p252_p1 = pnand %p250_p0, %p247_p13 }
  0xc7   :  { %255 = shalt.err (!%p252_p1)
}
  0xc8   :  { %s278_s14 = smov 128  }
  0xc9   :  { %187 = dma.vmem_to_hbm [thread:$0]  %s182_s5, 256, %s332_s1, [#allocation4], %s278_s14, %s278_s14, %s276_s3  }
  0xca   :  { %258 = dma.done.wait [#allocation4], 256  }
  0xcb   :  { %259 = vsyncadd [#allocation4], 4294967040 }
  0xcc   :  { %191 = vsyncpa [#allocation3], 1 }
  0xcd   :  { %192 = vsyncpa [#allocation4], 1 }

</bundles_post_ra>
